<compile_context>
chip_gen: v5e
topology: v5e:2x2
jax: 0.10.0
libtpu: 0.0.40
codegen_flags: <defaults>
</compile_context>

<pallas_src>
import functools
import math

import jax
import jax.numpy as jnp
from jax.experimental import pallas as pl
from jax.experimental.pallas import tpu as pltpu

# ---------------- model hyper-parameters (small demo shapes) ------------------
D_MODEL = 32      # d_model
NHEAD = 4         # nhead
DIM_FF = 64       # dim_feedforward
SEQ = 8           # L
BATCH = 2         # N
LN_EPS = 1e-5


def _layernorm(x, gamma, beta):
    mu = jnp.mean(x, axis=-1, keepdims=True)
    var = jnp.mean((x - mu) * (x - mu), axis=-1, keepdims=True)
    inv = jax.lax.rsqrt(var + LN_EPS)
    return (x - mu) * inv * gamma + beta


def encoder_layer_kernel(
    x_ref,        # (N*L, E)   activations, whole batch
    wqkv_ref,     # (E, 3E)    fused in-projection (1/sqrt(hd) folded into q cols)
    wo_ref,       # (E, E)
    w1_ref,       # (E, F)
    w2_ref,       # (F, E)
    vec_ref,      # (8, max(3E, F)) packed bias / LayerNorm vectors
    out_ref,      # (N*L, E)
    attn_ref,     # (N*L, L)   head-averaged attention rows, batches stacked
    *, n_batch, seq, nhead,
):
    x = x_ref[...].astype(jnp.float32)                   # (NL, E)
    E = x.shape[-1]
    F = w1_ref.shape[-1]
    hd = E // nhead

    vec = vec_ref[...].astype(jnp.float32)
    b_qkv = vec[0:1, : 3 * E]                            # (1, 3E)
    bo    = vec[1:2, :E]
    b1    = vec[2:3, :F]
    b2    = vec[3:4, :E]
    g1    = vec[4:5, :E]
    be1   = vec[5:6, :E]
    g2    = vec[6:7, :E]
    be2   = vec[7:8, :E]

    # ---- fused in-projection: q | k | v in one MXU pass ----------------------
    qkv = jnp.dot(x, wqkv_ref[...], preferred_element_type=jnp.float32) + b_qkv
    q = qkv[:, :E]             # already scaled by 1/sqrt(hd) (folded into wq/bq)
    k = qkv[:, E:2 * E]
    v = qkv[:, 2 * E:]

    wo = wo_ref[...].astype(jnp.float32)

    # contract head dim of q with head dim of k (no explicit transpose)
    dn_qkT = (((1,), (1,)), ((), ()))
    inv_h = 1.0 / nhead

    sa_rows = []
    attn_rows = []
    for b in range(n_batch):                              # small static loops
        rows = slice(b * seq, (b + 1) * seq)
        sa_b = jnp.zeros((seq, E), jnp.float32)
        attn_b = jnp.zeros((seq, seq), jnp.float32)
        for h in range(nhead):
            cols = slice(h * hd, (h + 1) * hd)
            qh = q[rows, cols]                            # (L, hd)
            kh = k[rows, cols]
            vh = v[rows, cols]
            s = jax.lax.dot_general(qh, kh, dn_qkT,
                                    preferred_element_type=jnp.float32)  # (L, L)
            s = s - jnp.max(s, axis=-1, keepdims=True)
            p = jnp.exp(s)
            p = p * pl.reciprocal(jnp.sum(p, axis=-1, keepdims=True), approx=True)
            oh = jnp.dot(p, vh, preferred_element_type=jnp.float32)      # (L, hd)
            # fuse head-concat into the output projection (accumulate vs Wo rows)
            sa_b = sa_b + jnp.dot(oh, wo[cols, :], preferred_element_type=jnp.float32)
            attn_b = attn_b + p
        sa_rows.append(sa_b)
        attn_rows.append(attn_b * inv_h)

    sa = jnp.concatenate(sa_rows, axis=0) + bo            # (NL, E)
    attn_all = jnp.concatenate(attn_rows, axis=0)         # (NL, L)

    # ---- residual + norm1 ----------------------------------------------------
    x1 = _layernorm(x + sa, g1, be1)

    # ---- feed-forward: linear1 -> ReLU -> linear2 ----------------------------
    ff = jnp.dot(x1, w1_ref[...], preferred_element_type=jnp.float32) + b1
    ff = jnp.maximum(ff, 0.0)
    ff = jnp.dot(ff, w2_ref[...], preferred_element_type=jnp.float32) + b2

    # ---- residual + norm2 ----------------------------------------------------
    x2 = _layernorm(x1 + ff, g2, be2)

    out_ref[...] = x2.astype(out_ref.dtype)
    attn_ref[...] = attn_all.astype(attn_ref.dtype)


def init_params(key, d_model=D_MODEL, nhead=NHEAD, dim_ff=DIM_FF):
    ks = jax.random.split(key, 10)
    s = 0.05
    return {
        # nn.MultiheadAttention
        "in_proj_weight": jax.random.normal(ks[0], (3 * d_model, d_model), jnp.float32) * s,
        "in_proj_bias": jax.random.normal(ks[1], (3 * d_model,), jnp.float32) * s,
        "out_proj_weight": jax.random.normal(ks[2], (d_model, d_model), jnp.float32) * s,
        "out_proj_bias": jax.random.normal(ks[3], (d_model,), jnp.float32) * s,
        # linear1 / linear2
        "linear1_weight": jax.random.normal(ks[4], (dim_ff, d_model), jnp.float32) * s,
        "linear1_bias": jax.random.normal(ks[5], (dim_ff,), jnp.float32) * s,
        "linear2_weight": jax.random.normal(ks[6], (d_model, dim_ff), jnp.float32) * s,
        "linear2_bias": jax.random.normal(ks[7], (d_model,), jnp.float32) * s,
        # layer norms
        "norm1_weight": 1.0 + jax.random.normal(ks[8], (d_model,), jnp.float32) * s,
        "norm1_bias": jnp.zeros((d_model,), jnp.float32),
        "norm2_weight": 1.0 + jax.random.normal(ks[9], (d_model,), jnp.float32) * s,
        "norm2_bias": jnp.zeros((d_model,), jnp.float32),
    }


def prepare_params(params, nhead=NHEAD):
    """One-time conversion of PyTorch-layout parameters to kernel layout.

    Fuses q|k|v weights/biases, folds the 1/sqrt(head_dim) softmax scale into
    the q columns, transposes every weight to x @ W form, and packs all small
    vectors into one (8, max(3E, F)) slab. Hoisted out of the per-call path.
    """
    E = params["out_proj_bias"].shape[0]
    F = params["linear1_bias"].shape[0]
    hd = E // nhead
    scale = 1.0 / math.sqrt(hd)

    w_in = params["in_proj_weight"]                     # (3E, E), rows = q|k|v
    b_in = params["in_proj_bias"]                       # (3E,)
    wqkv = jnp.concatenate(
        [w_in[:E].T * scale, w_in[E:2 * E].T, w_in[2 * E:].T], axis=1)   # (E, 3E)
    b_qkv = jnp.concatenate(
        [b_in[:E] * scale, b_in[E:2 * E], b_in[2 * E:]])                 # (3E,)

    width = max(3 * E, F)

    def row(v):
        return jnp.pad(v.astype(jnp.float32), (0, width - v.shape[0])).reshape(1, width)

    vec = jnp.concatenate([
        row(b_qkv),
        row(params["out_proj_bias"]),
        row(params["linear1_bias"]),
        row(params["linear2_bias"]),
        row(params["norm1_weight"]),
        row(params["norm1_bias"]),
        row(params["norm2_weight"]),
        row(params["norm2_bias"]),
    ], axis=0)                                          # (8, width)

    return {
        "wqkv": wqkv,                                   # (E, 3E)
        "wo": params["out_proj_weight"].T,              # (E, E)
        "w1": params["linear1_weight"].T,               # (E, F)
        "w2": params["linear2_weight"].T,               # (F, E)
        "vec": vec,                                     # (8, width)
    }


@functools.partial(jax.jit, static_argnames=("nhead",))
def transformer_encoder_layer(src, prep, nhead=NHEAD):
    """src: (L, N, E) like PyTorch. Returns (out (L, N, E), attn (N, L, L))."""
    L, N, E = src.shape

    x = jnp.transpose(src, (1, 0, 2)).reshape(N * L, E)   # (NL, E)

    vmem = functools.partial(pl.BlockSpec, memory_space=pltpu.MemorySpace.VMEM)

    out, attn = pl.pallas_call(
        functools.partial(encoder_layer_kernel, n_batch=N, seq=L, nhead=nhead),
        out_shape=(
            jax.ShapeDtypeStruct((N * L, E), src.dtype),
            jax.ShapeDtypeStruct((N * L, L), jnp.float32),
        ),
        in_specs=[vmem() for _ in range(6)],
        out_specs=(vmem(), vmem()),
    )(x, prep["wqkv"], prep["wo"], prep["w1"], prep["w2"], prep["vec"])

    out = jnp.transpose(out.reshape(N, L, E), (1, 0, 2))   # (L, N, E)
    attn = attn.reshape(N, L, L)
    return out, attn


def reference_encoder_layer(src, params, nhead=NHEAD):
    """Pure-JAX reference matching nn.TransformerEncoderLayer (eval mode)."""
    L, N, E = src.shape
    hd = E // nhead
    x = jnp.transpose(src, (1, 0, 2)).astype(jnp.float32)          # (N, L, E)
    w_in, b_in = params["in_proj_weight"], params["in_proj_bias"]
    q = x @ w_in[:E].T + b_in[:E]
    k = x @ w_in[E:2 * E].T + b_in[E:2 * E]
    v = x @ w_in[2 * E:].T + b_in[2 * E:]
    sh = lambda t: t.reshape(N, L, nhead, hd).transpose(0, 2, 1, 3)
    s = jnp.einsum("nhqd,nhkd->nhqk", sh(q), sh(k)) / math.sqrt(hd)
    p = jax.nn.softmax(s, axis=-1)
    o = jnp.einsum("nhqk,nhkd->nhqd", p, sh(v)).transpose(0, 2, 1, 3).reshape(N, L, E)
    sa = o @ params["out_proj_weight"].T + params["out_proj_bias"]

    def ln(t, g, b):
        mu = t.mean(-1, keepdims=True)
        var = ((t - mu) ** 2).mean(-1, keepdims=True)
        return (t - mu) / jnp.sqrt(var + LN_EPS) * g + b

    x1 = ln(x + sa, params["norm1_weight"], params["norm1_bias"])
    ff = jnp.maximum(x1 @ params["linear1_weight"].T + params["linear1_bias"], 0.0)
    ff = ff @ params["linear2_weight"].T + params["linear2_bias"]
    x2 = ln(x1 + ff, params["norm2_weight"], params["norm2_bias"])
    return jnp.transpose(x2, (1, 0, 2)), p.mean(axis=1)


if __name__ == "__main__":
    key = jax.random.PRNGKey(0)
    k_x, k_p = jax.random.split(key)

    src = jax.random.normal(k_x, (SEQ, BATCH, D_MODEL), jnp.float32)
    params = init_params(k_p)
    prep = prepare_params(params)          # one-time weight layout prep

    out, attn = transformer_encoder_layer(src, prep)
    out = jax.block_until_ready(out)
    attn = jax.block_until_ready(attn)

    assert out.shape == (SEQ, BATCH, D_MODEL)
    assert attn.shape == (BATCH, SEQ, SEQ)
    # attention rows sum to ~1 (approx-reciprocal softmax -> loosened tolerance)
    assert jnp.allclose(jnp.sum(attn, axis=-1), 1.0, atol=1e-2)

    # check against pure-JAX reference
    out_ref, attn_ref = reference_encoder_layer(src, params)
    assert jnp.allclose(out, out_ref, atol=1e-2, rtol=1e-2)
    assert jnp.allclose(attn, attn_ref, atol=1e-2, rtol=1e-2)

    print("KERNEL_OK")
</pallas_src>

<mosaic_0001>
module attributes {stable_mosaic.version = 11 : i64} {
  func.func @encoder_layer_kernel(%arg0: memref<16x32xf32, #tpu.memory_space<vmem>>, %arg1: memref<32x96xf32, #tpu.memory_space<vmem>>, %arg2: memref<32x32xf32, #tpu.memory_space<vmem>>, %arg3: memref<32x64xf32, #tpu.memory_space<vmem>>, %arg4: memref<64x32xf32, #tpu.memory_space<vmem>>, %arg5: memref<8x96xf32, #tpu.memory_space<vmem>>, %arg6: memref<16x32xf32, #tpu.memory_space<vmem>>, %arg7: memref<16x8xf32, #tpu.memory_space<vmem>>) attributes {dimension_semantics = [], scalar_prefetch = 0 : i64, scratch_operands = 0 : i64, tpu.core_type = #tpu.core_type<tc>} {
    %c0 = arith.constant 0 : index
    %c0_0 = arith.constant 0 : index
    %0 = vector.load %arg0[%c0, %c0_0] : memref<16x32xf32, #tpu.memory_space<vmem>>, vector<16x32xf32>
    %c0_1 = arith.constant 0 : index
    %c0_2 = arith.constant 0 : index
    %1 = vector.load %arg5[%c0_1, %c0_2] : memref<8x96xf32, #tpu.memory_space<vmem>>, vector<8x96xf32>
    %2 = vector.extract_strided_slice %1 {offsets = [0, 0], sizes = [1, 96], strides = [1, 1]} : vector<8x96xf32> to vector<1x96xf32>
    %3 = vector.extract_strided_slice %1 {offsets = [1, 0], sizes = [1, 32], strides = [1, 1]} : vector<8x96xf32> to vector<1x32xf32>
    %4 = vector.extract_strided_slice %1 {offsets = [2, 0], sizes = [1, 64], strides = [1, 1]} : vector<8x96xf32> to vector<1x64xf32>
    %5 = vector.extract_strided_slice %1 {offsets = [3, 0], sizes = [1, 32], strides = [1, 1]} : vector<8x96xf32> to vector<1x32xf32>
    %6 = vector.extract_strided_slice %1 {offsets = [4, 0], sizes = [1, 32], strides = [1, 1]} : vector<8x96xf32> to vector<1x32xf32>
    %7 = vector.extract_strided_slice %1 {offsets = [5, 0], sizes = [1, 32], strides = [1, 1]} : vector<8x96xf32> to vector<1x32xf32>
    %8 = vector.extract_strided_slice %1 {offsets = [6, 0], sizes = [1, 32], strides = [1, 1]} : vector<8x96xf32> to vector<1x32xf32>
    %9 = vector.extract_strided_slice %1 {offsets = [7, 0], sizes = [1, 32], strides = [1, 1]} : vector<8x96xf32> to vector<1x32xf32>
    %c0_3 = arith.constant 0 : index
    %c0_4 = arith.constant 0 : index
    %10 = vector.load %arg1[%c0_3, %c0_4] : memref<32x96xf32, #tpu.memory_space<vmem>>, vector<32x96xf32>
    %cst = arith.constant dense<0.000000e+00> : vector<16x96xf32>
    %11 = tpu.matmul %0, %10, %cst {dimension_numbers = #tpu.dot_dimension_numbers<[1], [0], [0], [1], [0, 0, 1, 1], [], []>} : vector<16x32xf32>, vector<32x96xf32>, vector<16x96xf32> -> vector<16x96xf32>
    %12 = vector.broadcast %2 : vector<1x96xf32> to vector<16x96xf32>
    %13 = arith.addf %11, %12 : vector<16x96xf32>
    %14 = vector.extract_strided_slice %13 {offsets = [0, 0], sizes = [16, 32], strides = [1, 1]} : vector<16x96xf32> to vector<16x32xf32>
    %15 = vector.extract_strided_slice %13 {offsets = [0, 32], sizes = [16, 32], strides = [1, 1]} : vector<16x96xf32> to vector<16x32xf32>
    %16 = vector.extract_strided_slice %13 {offsets = [0, 64], sizes = [16, 32], strides = [1, 1]} : vector<16x96xf32> to vector<16x32xf32>
    %c0_5 = arith.constant 0 : index
    %c0_6 = arith.constant 0 : index
    %17 = vector.load %arg2[%c0_5, %c0_6] : memref<32x32xf32, #tpu.memory_space<vmem>>, vector<32x32xf32>
    %cst_7 = arith.constant 0.000000e+00 : f32
    %18 = vector.broadcast %cst_7 : f32 to vector<8x32xf32>
    %cst_8 = arith.constant 0.000000e+00 : f32
    %19 = vector.broadcast %cst_8 : f32 to vector<8x8xf32>
    %20 = vector.extract_strided_slice %14 {offsets = [0, 0], sizes = [8, 8], strides = [1, 1]} : vector<16x32xf32> to vector<8x8xf32>
    %21 = vector.extract_strided_slice %15 {offsets = [0, 0], sizes = [8, 8], strides = [1, 1]} : vector<16x32xf32> to vector<8x8xf32>
    %22 = vector.extract_strided_slice %16 {offsets = [0, 0], sizes = [8, 8], strides = [1, 1]} : vector<16x32xf32> to vector<8x8xf32>
    %cst_9 = arith.constant dense<0.000000e+00> : vector<8x8xf32>
    %23 = tpu.matmul %20, %21, %cst_9 {dimension_numbers = #tpu.dot_dimension_numbers<[1], [1], [0], [0], [0, 0, 1, 0], [], []>} : vector<8x8xf32>, vector<8x8xf32>, vector<8x8xf32> -> vector<8x8xf32>
    %cst_10 = arith.constant dense<0xFF800000> : vector<8xf32>
    %24 = vector.multi_reduction <maximumf>, %23, %cst_10 [1] : vector<8x8xf32> to vector<8xf32>
    %25 = vector.shape_cast %24 : vector<8xf32> to vector<8x1xf32>
    %26 = vector.broadcast %25 : vector<8x1xf32> to vector<8x8xf32>
    %27 = arith.subf %23, %26 : vector<8x8xf32>
    %28 = math.exp %27 : vector<8x8xf32>
    %cst_11 = arith.constant dense<0.000000e+00> : vector<8xf32>
    %29 = vector.multi_reduction <add>, %28, %cst_11 [1] : vector<8x8xf32> to vector<8xf32>
    %30 = vector.shape_cast %29 : vector<8xf32> to vector<8x1xf32>
    %31 = tpu.reciprocal %30 {approx = true} : vector<8x1xf32> -> vector<8x1xf32>
    %32 = vector.broadcast %31 : vector<8x1xf32> to vector<8x8xf32>
    %33 = arith.mulf %28, %32 : vector<8x8xf32>
    %cst_12 = arith.constant dense<0.000000e+00> : vector<8x8xf32>
    %34 = tpu.matmul %33, %22, %cst_12 {dimension_numbers = #tpu.dot_dimension_numbers<[1], [0], [0], [1], [0, 0, 1, 1], [], []>} : vector<8x8xf32>, vector<8x8xf32>, vector<8x8xf32> -> vector<8x8xf32>
    %35 = vector.extract_strided_slice %17 {offsets = [0, 0], sizes = [8, 32], strides = [1, 1]} : vector<32x32xf32> to vector<8x32xf32>
    %cst_13 = arith.constant dense<0.000000e+00> : vector<8x32xf32>
    %36 = tpu.matmul %34, %35, %cst_13 {dimension_numbers = #tpu.dot_dimension_numbers<[1], [0], [0], [1], [0, 0, 1, 1], [], []>} : vector<8x8xf32>, vector<8x32xf32>, vector<8x32xf32> -> vector<8x32xf32>
    %37 = arith.addf %18, %36 : vector<8x32xf32>
    %38 = arith.addf %19, %33 : vector<8x8xf32>
    %39 = vector.extract_strided_slice %14 {offsets = [0, 8], sizes = [8, 8], strides = [1, 1]} : vector<16x32xf32> to vector<8x8xf32>
    %40 = vector.extract_strided_slice %15 {offsets = [0, 8], sizes = [8, 8], strides = [1, 1]} : vector<16x32xf32> to vector<8x8xf32>
    %41 = vector.extract_strided_slice %16 {offsets = [0, 8], sizes = [8, 8], strides = [1, 1]} : vector<16x32xf32> to vector<8x8xf32>
    %cst_14 = arith.constant dense<0.000000e+00> : vector<8x8xf32>
    %42 = tpu.matmul %39, %40, %cst_14 {dimension_numbers = #tpu.dot_dimension_numbers<[1], [1], [0], [0], [0, 0, 1, 0], [], []>} : vector<8x8xf32>, vector<8x8xf32>, vector<8x8xf32> -> vector<8x8xf32>
    %cst_15 = arith.constant dense<0xFF800000> : vector<8xf32>
    %43 = vector.multi_reduction <maximumf>, %42, %cst_15 [1] : vector<8x8xf32> to vector<8xf32>
    %44 = vector.shape_cast %43 : vector<8xf32> to vector<8x1xf32>
    %45 = vector.broadcast %44 : vector<8x1xf32> to vector<8x8xf32>
    %46 = arith.subf %42, %45 : vector<8x8xf32>
    %47 = math.exp %46 : vector<8x8xf32>
    %cst_16 = arith.constant dense<0.000000e+00> : vector<8xf32>
    %48 = vector.multi_reduction <add>, %47, %cst_16 [1] : vector<8x8xf32> to vector<8xf32>
    %49 = vector.shape_cast %48 : vector<8xf32> to vector<8x1xf32>
    %50 = tpu.reciprocal %49 {approx = true} : vector<8x1xf32> -> vector<8x1xf32>
    %51 = vector.broadcast %50 : vector<8x1xf32> to vector<8x8xf32>
    %52 = arith.mulf %47, %51 : vector<8x8xf32>
    %cst_17 = arith.constant dense<0.000000e+00> : vector<8x8xf32>
    %53 = tpu.matmul %52, %41, %cst_17 {dimension_numbers = #tpu.dot_dimension_numbers<[1], [0], [0], [1], [0, 0, 1, 1], [], []>} : vector<8x8xf32>, vector<8x8xf32>, vector<8x8xf32> -> vector<8x8xf32>
    %54 = vector.extract_strided_slice %17 {offsets = [8, 0], sizes = [8, 32], strides = [1, 1]} : vector<32x32xf32> to vector<8x32xf32>
    %cst_18 = arith.constant dense<0.000000e+00> : vector<8x32xf32>
    %55 = tpu.matmul %53, %54, %cst_18 {dimension_numbers = #tpu.dot_dimension_numbers<[1], [0], [0], [1], [0, 0, 1, 1], [], []>} : vector<8x8xf32>, vector<8x32xf32>, vector<8x32xf32> -> vector<8x32xf32>
    %56 = arith.addf %37, %55 : vector<8x32xf32>
    %57 = arith.addf %38, %52 : vector<8x8xf32>
    %58 = vector.extract_strided_slice %14 {offsets = [0, 16], sizes = [8, 8], strides = [1, 1]} : vector<16x32xf32> to vector<8x8xf32>
    %59 = vector.extract_strided_slice %15 {offsets = [0, 16], sizes = [8, 8], strides = [1, 1]} : vector<16x32xf32> to vector<8x8xf32>
    %60 = vector.extract_strided_slice %16 {offsets = [0, 16], sizes = [8, 8], strides = [1, 1]} : vector<16x32xf32> to vector<8x8xf32>
    %cst_19 = arith.constant dense<0.000000e+00> : vector<8x8xf32>
    %61 = tpu.matmul %58, %59, %cst_19 {dimension_numbers = #tpu.dot_dimension_numbers<[1], [1], [0], [0], [0, 0, 1, 0], [], []>} : vector<8x8xf32>, vector<8x8xf32>, vector<8x8xf32> -> vector<8x8xf32>
    %cst_20 = arith.constant dense<0xFF800000> : vector<8xf32>
    %62 = vector.multi_reduction <maximumf>, %61, %cst_20 [1] : vector<8x8xf32> to vector<8xf32>
    %63 = vector.shape_cast %62 : vector<8xf32> to vector<8x1xf32>
    %64 = vector.broadcast %63 : vector<8x1xf32> to vector<8x8xf32>
    %65 = arith.subf %61, %64 : vector<8x8xf32>
    %66 = math.exp %65 : vector<8x8xf32>
    %cst_21 = arith.constant dense<0.000000e+00> : vector<8xf32>
    %67 = vector.multi_reduction <add>, %66, %cst_21 [1] : vector<8x8xf32> to vector<8xf32>
    %68 = vector.shape_cast %67 : vector<8xf32> to vector<8x1xf32>
    %69 = tpu.reciprocal %68 {approx = true} : vector<8x1xf32> -> vector<8x1xf32>
    %70 = vector.broadcast %69 : vector<8x1xf32> to vector<8x8xf32>
    %71 = arith.mulf %66, %70 : vector<8x8xf32>
    %cst_22 = arith.constant dense<0.000000e+00> : vector<8x8xf32>
    %72 = tpu.matmul %71, %60, %cst_22 {dimension_numbers = #tpu.dot_dimension_numbers<[1], [0], [0], [1], [0, 0, 1, 1], [], []>} : vector<8x8xf32>, vector<8x8xf32>, vector<8x8xf32> -> vector<8x8xf32>
    %73 = vector.extract_strided_slice %17 {offsets = [16, 0], sizes = [8, 32], strides = [1, 1]} : vector<32x32xf32> to vector<8x32xf32>
    %cst_23 = arith.constant dense<0.000000e+00> : vector<8x32xf32>
    %74 = tpu.matmul %72, %73, %cst_23 {dimension_numbers = #tpu.dot_dimension_numbers<[1], [0], [0], [1], [0, 0, 1, 1], [], []>} : vector<8x8xf32>, vector<8x32xf32>, vector<8x32xf32> -> vector<8x32xf32>
    %75 = arith.addf %56, %74 : vector<8x32xf32>
    %76 = arith.addf %57, %71 : vector<8x8xf32>
    %77 = vector.extract_strided_slice %14 {offsets = [0, 24], sizes = [8, 8], strides = [1, 1]} : vector<16x32xf32> to vector<8x8xf32>
    %78 = vector.extract_strided_slice %15 {offsets = [0, 24], sizes = [8, 8], strides = [1, 1]} : vector<16x32xf32> to vector<8x8xf32>
    %79 = vector.extract_strided_slice %16 {offsets = [0, 24], sizes = [8, 8], strides = [1, 1]} : vector<16x32xf32> to vector<8x8xf32>
    %cst_24 = arith.constant dense<0.000000e+00> : vector<8x8xf32>
    %80 = tpu.matmul %77, %78, %cst_24 {dimension_numbers = #tpu.dot_dimension_numbers<[1], [1], [0], [0], [0, 0, 1, 0], [], []>} : vector<8x8xf32>, vector<8x8xf32>, vector<8x8xf32> -> vector<8x8xf32>
    %cst_25 = arith.constant dense<0xFF800000> : vector<8xf32>
    %81 = vector.multi_reduction <maximumf>, %80, %cst_25 [1] : vector<8x8xf32> to vector<8xf32>
    %82 = vector.shape_cast %81 : vector<8xf32> to vector<8x1xf32>
    %83 = vector.broadcast %82 : vector<8x1xf32> to vector<8x8xf32>
    %84 = arith.subf %80, %83 : vector<8x8xf32>
    %85 = math.exp %84 : vector<8x8xf32>
    %cst_26 = arith.constant dense<0.000000e+00> : vector<8xf32>
    %86 = vector.multi_reduction <add>, %85, %cst_26 [1] : vector<8x8xf32> to vector<8xf32>
    %87 = vector.shape_cast %86 : vector<8xf32> to vector<8x1xf32>
    %88 = tpu.reciprocal %87 {approx = true} : vector<8x1xf32> -> vector<8x1xf32>
    %89 = vector.broadcast %88 : vector<8x1xf32> to vector<8x8xf32>
    %90 = arith.mulf %85, %89 : vector<8x8xf32>
    %cst_27 = arith.constant dense<0.000000e+00> : vector<8x8xf32>
    %91 = tpu.matmul %90, %79, %cst_27 {dimension_numbers = #tpu.dot_dimension_numbers<[1], [0], [0], [1], [0, 0, 1, 1], [], []>} : vector<8x8xf32>, vector<8x8xf32>, vector<8x8xf32> -> vector<8x8xf32>
    %92 = vector.extract_strided_slice %17 {offsets = [24, 0], sizes = [8, 32], strides = [1, 1]} : vector<32x32xf32> to vector<8x32xf32>
    %cst_28 = arith.constant dense<0.000000e+00> : vector<8x32xf32>
    %93 = tpu.matmul %91, %92, %cst_28 {dimension_numbers = #tpu.dot_dimension_numbers<[1], [0], [0], [1], [0, 0, 1, 1], [], []>} : vector<8x8xf32>, vector<8x32xf32>, vector<8x32xf32> -> vector<8x32xf32>
    %94 = arith.addf %75, %93 : vector<8x32xf32>
    %95 = arith.addf %76, %90 : vector<8x8xf32>
    %cst_29 = arith.constant 2.500000e-01 : f32
    %96 = vector.broadcast %cst_29 : f32 to vector<8x8xf32>
    %97 = arith.mulf %95, %96 : vector<8x8xf32>
    %cst_30 = arith.constant 0.000000e+00 : f32
    %98 = vector.broadcast %cst_30 : f32 to vector<8x32xf32>
    %cst_31 = arith.constant 0.000000e+00 : f32
    %99 = vector.broadcast %cst_31 : f32 to vector<8x8xf32>
    %100 = vector.extract_strided_slice %14 {offsets = [8, 0], sizes = [8, 8], strides = [1, 1]} : vector<16x32xf32> to vector<8x8xf32>
    %101 = vector.extract_strided_slice %15 {offsets = [8, 0], sizes = [8, 8], strides = [1, 1]} : vector<16x32xf32> to vector<8x8xf32>
    %102 = vector.extract_strided_slice %16 {offsets = [8, 0], sizes = [8, 8], strides = [1, 1]} : vector<16x32xf32> to vector<8x8xf32>
    %cst_32 = arith.constant dense<0.000000e+00> : vector<8x8xf32>
    %103 = tpu.matmul %100, %101, %cst_32 {dimension_numbers = #tpu.dot_dimension_numbers<[1], [1], [0], [0], [0, 0, 1, 0], [], []>} : vector<8x8xf32>, vector<8x8xf32>, vector<8x8xf32> -> vector<8x8xf32>
    %cst_33 = arith.constant dense<0xFF800000> : vector<8xf32>
    %104 = vector.multi_reduction <maximumf>, %103, %cst_33 [1] : vector<8x8xf32> to vector<8xf32>
    %105 = vector.shape_cast %104 : vector<8xf32> to vector<8x1xf32>
    %106 = vector.broadcast %105 : vector<8x1xf32> to vector<8x8xf32>
    %107 = arith.subf %103, %106 : vector<8x8xf32>
    %108 = math.exp %107 : vector<8x8xf32>
    %cst_34 = arith.constant dense<0.000000e+00> : vector<8xf32>
    %109 = vector.multi_reduction <add>, %108, %cst_34 [1] : vector<8x8xf32> to vector<8xf32>
    %110 = vector.shape_cast %109 : vector<8xf32> to vector<8x1xf32>
    %111 = tpu.reciprocal %110 {approx = true} : vector<8x1xf32> -> vector<8x1xf32>
    %112 = vector.broadcast %111 : vector<8x1xf32> to vector<8x8xf32>
    %113 = arith.mulf %108, %112 : vector<8x8xf32>
    %cst_35 = arith.constant dense<0.000000e+00> : vector<8x8xf32>
    %114 = tpu.matmul %113, %102, %cst_35 {dimension_numbers = #tpu.dot_dimension_numbers<[1], [0], [0], [1], [0, 0, 1, 1], [], []>} : vector<8x8xf32>, vector<8x8xf32>, vector<8x8xf32> -> vector<8x8xf32>
    %115 = vector.extract_strided_slice %17 {offsets = [0, 0], sizes = [8, 32], strides = [1, 1]} : vector<32x32xf32> to vector<8x32xf32>
    %cst_36 = arith.constant dense<0.000000e+00> : vector<8x32xf32>
    %116 = tpu.matmul %114, %115, %cst_36 {dimension_numbers = #tpu.dot_dimension_numbers<[1], [0], [0], [1], [0, 0, 1, 1], [], []>} : vector<8x8xf32>, vector<8x32xf32>, vector<8x32xf32> -> vector<8x32xf32>
    %117 = arith.addf %98, %116 : vector<8x32xf32>
    %118 = arith.addf %99, %113 : vector<8x8xf32>
    %119 = vector.extract_strided_slice %14 {offsets = [8, 8], sizes = [8, 8], strides = [1, 1]} : vector<16x32xf32> to vector<8x8xf32>
    %120 = vector.extract_strided_slice %15 {offsets = [8, 8], sizes = [8, 8], strides = [1, 1]} : vector<16x32xf32> to vector<8x8xf32>
    %121 = vector.extract_strided_slice %16 {offsets = [8, 8], sizes = [8, 8], strides = [1, 1]} : vector<16x32xf32> to vector<8x8xf32>
    %cst_37 = arith.constant dense<0.000000e+00> : vector<8x8xf32>
    %122 = tpu.matmul %119, %120, %cst_37 {dimension_numbers = #tpu.dot_dimension_numbers<[1], [1], [0], [0], [0, 0, 1, 0], [], []>} : vector<8x8xf32>, vector<8x8xf32>, vector<8x8xf32> -> vector<8x8xf32>
    %cst_38 = arith.constant dense<0xFF800000> : vector<8xf32>
    %123 = vector.multi_reduction <maximumf>, %122, %cst_38 [1] : vector<8x8xf32> to vector<8xf32>
    %124 = vector.shape_cast %123 : vector<8xf32> to vector<8x1xf32>
    %125 = vector.broadcast %124 : vector<8x1xf32> to vector<8x8xf32>
    %126 = arith.subf %122, %125 : vector<8x8xf32>
    %127 = math.exp %126 : vector<8x8xf32>
    %cst_39 = arith.constant dense<0.000000e+00> : vector<8xf32>
    %128 = vector.multi_reduction <add>, %127, %cst_39 [1] : vector<8x8xf32> to vector<8xf32>
    %129 = vector.shape_cast %128 : vector<8xf32> to vector<8x1xf32>
    %130 = tpu.reciprocal %129 {approx = true} : vector<8x1xf32> -> vector<8x1xf32>
    %131 = vector.broadcast %130 : vector<8x1xf32> to vector<8x8xf32>
    %132 = arith.mulf %127, %131 : vector<8x8xf32>
    %cst_40 = arith.constant dense<0.000000e+00> : vector<8x8xf32>
    %133 = tpu.matmul %132, %121, %cst_40 {dimension_numbers = #tpu.dot_dimension_numbers<[1], [0], [0], [1], [0, 0, 1, 1], [], []>} : vector<8x8xf32>, vector<8x8xf32>, vector<8x8xf32> -> vector<8x8xf32>
    %134 = vector.extract_strided_slice %17 {offsets = [8, 0], sizes = [8, 32], strides = [1, 1]} : vector<32x32xf32> to vector<8x32xf32>
    %cst_41 = arith.constant dense<0.000000e+00> : vector<8x32xf32>
    %135 = tpu.matmul %133, %134, %cst_41 {dimension_numbers = #tpu.dot_dimension_numbers<[1], [0], [0], [1], [0, 0, 1, 1], [], []>} : vector<8x8xf32>, vector<8x32xf32>, vector<8x32xf32> -> vector<8x32xf32>
    %136 = arith.addf %117, %135 : vector<8x32xf32>
    %137 = arith.addf %118, %132 : vector<8x8xf32>
    %138 = vector.extract_strided_slice %14 {offsets = [8, 16], sizes = [8, 8], strides = [1, 1]} : vector<16x32xf32> to vector<8x8xf32>
    %139 = vector.extract_strided_slice %15 {offsets = [8, 16], sizes = [8, 8], strides = [1, 1]} : vector<16x32xf32> to vector<8x8xf32>
    %140 = vector.extract_strided_slice %16 {offsets = [8, 16], sizes = [8, 8], strides = [1, 1]} : vector<16x32xf32> to vector<8x8xf32>
    %cst_42 = arith.constant dense<0.000000e+00> : vector<8x8xf32>
    %141 = tpu.matmul %138, %139, %cst_42 {dimension_numbers = #tpu.dot_dimension_numbers<[1], [1], [0], [0], [0, 0, 1, 0], [], []>} : vector<8x8xf32>, vector<8x8xf32>, vector<8x8xf32> -> vector<8x8xf32>
    %cst_43 = arith.constant dense<0xFF800000> : vector<8xf32>
    %142 = vector.multi_reduction <maximumf>, %141, %cst_43 [1] : vector<8x8xf32> to vector<8xf32>
    %143 = vector.shape_cast %142 : vector<8xf32> to vector<8x1xf32>
    %144 = vector.broadcast %143 : vector<8x1xf32> to vector<8x8xf32>
    %145 = arith.subf %141, %144 : vector<8x8xf32>
    %146 = math.exp %145 : vector<8x8xf32>
    %cst_44 = arith.constant dense<0.000000e+00> : vector<8xf32>
    %147 = vector.multi_reduction <add>, %146, %cst_44 [1] : vector<8x8xf32> to vector<8xf32>
    %148 = vector.shape_cast %147 : vector<8xf32> to vector<8x1xf32>
    %149 = tpu.reciprocal %148 {approx = true} : vector<8x1xf32> -> vector<8x1xf32>
    %150 = vector.broadcast %149 : vector<8x1xf32> to vector<8x8xf32>
    %151 = arith.mulf %146, %150 : vector<8x8xf32>
    %cst_45 = arith.constant dense<0.000000e+00> : vector<8x8xf32>
    %152 = tpu.matmul %151, %140, %cst_45 {dimension_numbers = #tpu.dot_dimension_numbers<[1], [0], [0], [1], [0, 0, 1, 1], [], []>} : vector<8x8xf32>, vector<8x8xf32>, vector<8x8xf32> -> vector<8x8xf32>
    %153 = vector.extract_strided_slice %17 {offsets = [16, 0], sizes = [8, 32], strides = [1, 1]} : vector<32x32xf32> to vector<8x32xf32>
    %cst_46 = arith.constant dense<0.000000e+00> : vector<8x32xf32>
    %154 = tpu.matmul %152, %153, %cst_46 {dimension_numbers = #tpu.dot_dimension_numbers<[1], [0], [0], [1], [0, 0, 1, 1], [], []>} : vector<8x8xf32>, vector<8x32xf32>, vector<8x32xf32> -> vector<8x32xf32>
    %155 = arith.addf %136, %154 : vector<8x32xf32>
    %156 = arith.addf %137, %151 : vector<8x8xf32>
    %157 = vector.extract_strided_slice %14 {offsets = [8, 24], sizes = [8, 8], strides = [1, 1]} : vector<16x32xf32> to vector<8x8xf32>
    %158 = vector.extract_strided_slice %15 {offsets = [8, 24], sizes = [8, 8], strides = [1, 1]} : vector<16x32xf32> to vector<8x8xf32>
    %159 = vector.extract_strided_slice %16 {offsets = [8, 24], sizes = [8, 8], strides = [1, 1]} : vector<16x32xf32> to vector<8x8xf32>
    %cst_47 = arith.constant dense<0.000000e+00> : vector<8x8xf32>
    %160 = tpu.matmul %157, %158, %cst_47 {dimension_numbers = #tpu.dot_dimension_numbers<[1], [1], [0], [0], [0, 0, 1, 0], [], []>} : vector<8x8xf32>, vector<8x8xf32>, vector<8x8xf32> -> vector<8x8xf32>
    %cst_48 = arith.constant dense<0xFF800000> : vector<8xf32>
    %161 = vector.multi_reduction <maximumf>, %160, %cst_48 [1] : vector<8x8xf32> to vector<8xf32>
    %162 = vector.shape_cast %161 : vector<8xf32> to vector<8x1xf32>
    %163 = vector.broadcast %162 : vector<8x1xf32> to vector<8x8xf32>
    %164 = arith.subf %160, %163 : vector<8x8xf32>
    %165 = math.exp %164 : vector<8x8xf32>
    %cst_49 = arith.constant dense<0.000000e+00> : vector<8xf32>
    %166 = vector.multi_reduction <add>, %165, %cst_49 [1] : vector<8x8xf32> to vector<8xf32>
    %167 = vector.shape_cast %166 : vector<8xf32> to vector<8x1xf32>
    %168 = tpu.reciprocal %167 {approx = true} : vector<8x1xf32> -> vector<8x1xf32>
    %169 = vector.broadcast %168 : vector<8x1xf32> to vector<8x8xf32>
    %170 = arith.mulf %165, %169 : vector<8x8xf32>
    %cst_50 = arith.constant dense<0.000000e+00> : vector<8x8xf32>
    %171 = tpu.matmul %170, %159, %cst_50 {dimension_numbers = #tpu.dot_dimension_numbers<[1], [0], [0], [1], [0, 0, 1, 1], [], []>} : vector<8x8xf32>, vector<8x8xf32>, vector<8x8xf32> -> vector<8x8xf32>
    %172 = vector.extract_strided_slice %17 {offsets = [24, 0], sizes = [8, 32], strides = [1, 1]} : vector<32x32xf32> to vector<8x32xf32>
    %cst_51 = arith.constant dense<0.000000e+00> : vector<8x32xf32>
    %173 = tpu.matmul %171, %172, %cst_51 {dimension_numbers = #tpu.dot_dimension_numbers<[1], [0], [0], [1], [0, 0, 1, 1], [], []>} : vector<8x8xf32>, vector<8x32xf32>, vector<8x32xf32> -> vector<8x32xf32>
    %174 = arith.addf %155, %173 : vector<8x32xf32>
    %175 = arith.addf %156, %170 : vector<8x8xf32>
    %cst_52 = arith.constant 2.500000e-01 : f32
    %176 = vector.broadcast %cst_52 : f32 to vector<8x8xf32>
    %177 = arith.mulf %175, %176 : vector<8x8xf32>
    %178 = tpu.concatenate %94, %174 in 0 : vector<8x32xf32>, vector<8x32xf32> -> vector<16x32xf32>
    %179 = vector.broadcast %3 : vector<1x32xf32> to vector<16x32xf32>
    %180 = arith.addf %178, %179 : vector<16x32xf32>
    %181 = tpu.concatenate %97, %177 in 0 : vector<8x8xf32>, vector<8x8xf32> -> vector<16x8xf32>
    %182 = arith.addf %0, %180 : vector<16x32xf32>
    %cst_53 = arith.constant dense<0.000000e+00> : vector<16xf32>
    %183 = vector.multi_reduction <add>, %182, %cst_53 [1] : vector<16x32xf32> to vector<16xf32>
    %184 = vector.shape_cast %183 : vector<16xf32> to vector<16x1xf32>
    %cst_54 = arith.constant 3.200000e+01 : f32
    %185 = vector.broadcast %cst_54 : f32 to vector<16x1xf32>
    %186 = arith.divf %184, %185 : vector<16x1xf32>
    %187 = vector.broadcast %186 : vector<16x1xf32> to vector<16x32xf32>
    %188 = arith.subf %182, %187 : vector<16x32xf32>
    %189 = vector.broadcast %186 : vector<16x1xf32> to vector<16x32xf32>
    %190 = arith.subf %182, %189 : vector<16x32xf32>
    %191 = arith.mulf %188, %190 : vector<16x32xf32>
    %cst_55 = arith.constant dense<0.000000e+00> : vector<16xf32>
    %192 = vector.multi_reduction <add>, %191, %cst_55 [1] : vector<16x32xf32> to vector<16xf32>
    %193 = vector.shape_cast %192 : vector<16xf32> to vector<16x1xf32>
    %cst_56 = arith.constant 3.200000e+01 : f32
    %194 = vector.broadcast %cst_56 : f32 to vector<16x1xf32>
    %195 = arith.divf %193, %194 : vector<16x1xf32>
    %cst_57 = arith.constant 9.99999974E-6 : f32
    %196 = vector.broadcast %cst_57 : f32 to vector<16x1xf32>
    %197 = arith.addf %195, %196 : vector<16x1xf32>
    %198 = math.rsqrt %197 : vector<16x1xf32>
    %199 = vector.broadcast %186 : vector<16x1xf32> to vector<16x32xf32>
    %200 = arith.subf %182, %199 : vector<16x32xf32>
    %201 = vector.broadcast %198 : vector<16x1xf32> to vector<16x32xf32>
    %202 = arith.mulf %200, %201 : vector<16x32xf32>
    %203 = vector.broadcast %6 : vector<1x32xf32> to vector<16x32xf32>
    %204 = arith.mulf %202, %203 : vector<16x32xf32>
    %205 = vector.broadcast %7 : vector<1x32xf32> to vector<16x32xf32>
    %206 = arith.addf %204, %205 : vector<16x32xf32>
    %c0_58 = arith.constant 0 : index
    %c0_59 = arith.constant 0 : index
    %207 = vector.load %arg3[%c0_58, %c0_59] : memref<32x64xf32, #tpu.memory_space<vmem>>, vector<32x64xf32>
    %cst_60 = arith.constant dense<0.000000e+00> : vector<16x64xf32>
    %208 = tpu.matmul %206, %207, %cst_60 {dimension_numbers = #tpu.dot_dimension_numbers<[1], [0], [0], [1], [0, 0, 1, 1], [], []>} : vector<16x32xf32>, vector<32x64xf32>, vector<16x64xf32> -> vector<16x64xf32>
    %209 = vector.broadcast %4 : vector<1x64xf32> to vector<16x64xf32>
    %210 = arith.addf %208, %209 : vector<16x64xf32>
    %cst_61 = arith.constant 0.000000e+00 : f32
    %211 = vector.broadcast %cst_61 : f32 to vector<16x64xf32>
    %212 = arith.maximumf %210, %211 : vector<16x64xf32>
    %c0_62 = arith.constant 0 : index
    %c0_63 = arith.constant 0 : index
    %213 = vector.load %arg4[%c0_62, %c0_63] : memref<64x32xf32, #tpu.memory_space<vmem>>, vector<64x32xf32>
    %cst_64 = arith.constant dense<0.000000e+00> : vector<16x32xf32>
    %214 = tpu.matmul %212, %213, %cst_64 {dimension_numbers = #tpu.dot_dimension_numbers<[1], [0], [0], [1], [0, 0, 1, 1], [], []>} : vector<16x64xf32>, vector<64x32xf32>, vector<16x32xf32> -> vector<16x32xf32>
    %215 = vector.broadcast %5 : vector<1x32xf32> to vector<16x32xf32>
    %216 = arith.addf %214, %215 : vector<16x32xf32>
    %217 = arith.addf %206, %216 : vector<16x32xf32>
    %cst_65 = arith.constant dense<0.000000e+00> : vector<16xf32>
    %218 = vector.multi_reduction <add>, %217, %cst_65 [1] : vector<16x32xf32> to vector<16xf32>
    %219 = vector.shape_cast %218 : vector<16xf32> to vector<16x1xf32>
    %cst_66 = arith.constant 3.200000e+01 : f32
    %220 = vector.broadcast %cst_66 : f32 to vector<16x1xf32>
    %221 = arith.divf %219, %220 : vector<16x1xf32>
    %222 = vector.broadcast %221 : vector<16x1xf32> to vector<16x32xf32>
    %223 = arith.subf %217, %222 : vector<16x32xf32>
    %224 = vector.broadcast %221 : vector<16x1xf32> to vector<16x32xf32>
    %225 = arith.subf %217, %224 : vector<16x32xf32>
    %226 = arith.mulf %223, %225 : vector<16x32xf32>
    %cst_67 = arith.constant dense<0.000000e+00> : vector<16xf32>
    %227 = vector.multi_reduction <add>, %226, %cst_67 [1] : vector<16x32xf32> to vector<16xf32>
    %228 = vector.shape_cast %227 : vector<16xf32> to vector<16x1xf32>
    %cst_68 = arith.constant 3.200000e+01 : f32
    %229 = vector.broadcast %cst_68 : f32 to vector<16x1xf32>
    %230 = arith.divf %228, %229 : vector<16x1xf32>
    %cst_69 = arith.constant 9.99999974E-6 : f32
    %231 = vector.broadcast %cst_69 : f32 to vector<16x1xf32>
    %232 = arith.addf %230, %231 : vector<16x1xf32>
    %233 = math.rsqrt %232 : vector<16x1xf32>
    %234 = vector.broadcast %221 : vector<16x1xf32> to vector<16x32xf32>
    %235 = arith.subf %217, %234 : vector<16x32xf32>
    %236 = vector.broadcast %233 : vector<16x1xf32> to vector<16x32xf32>
    %237 = arith.mulf %235, %236 : vector<16x32xf32>
    %238 = vector.broadcast %8 : vector<1x32xf32> to vector<16x32xf32>
    %239 = arith.mulf %237, %238 : vector<16x32xf32>
    %240 = vector.broadcast %9 : vector<1x32xf32> to vector<16x32xf32>
    %241 = arith.addf %239, %240 : vector<16x32xf32>
    %c0_70 = arith.constant 0 : index
    %c0_71 = arith.constant 0 : index
    %242 = vector.load %arg6[%c0_70, %c0_71] : memref<16x32xf32, #tpu.memory_space<vmem>>, vector<16x32xf32>
    tpu.vector_store %arg6[%c0_70, %c0_71], %241 {strides = array<i32>} : memref<16x32xf32, #tpu.memory_space<vmem>>, vector<16x32xf32>,
    %c0_72 = arith.constant 0 : index
    %c0_73 = arith.constant 0 : index
    %243 = vector.load %arg7[%c0_72, %c0_73] : memref<16x8xf32, #tpu.memory_space<vmem>>, vector<16x8xf32>
    tpu.vector_store %arg7[%c0_72, %c0_73], %181 {strides = array<i32>} : memref<16x8xf32, #tpu.memory_space<vmem>>, vector<16x8xf32>,
    return
  }
}

</mosaic_0001>

<bundles_post_ra>
// kernel: transformer_encoder_layer.1
= control target key start
LH: loop header
LB: loop body
LE: loop exit
PB: predicated region body
PF: predicated region fallthrough
CT: control target
= control target key end

     0   :  { %13 = vsyncpa [#allocation3], 0  ;;  %s1479_s0 = inlined_call_operand.vmem [shape: f32[16,32], index: 0, kind: input, shape index: {}]   ;;  %s1480_s1 = inlined_call_operand.vmem [shape: f32[32,96], index: 1, kind: input, shape index: {}]   ;;  %s1481_s2 = inlined_call_operand.vmem [shape: f32[32,32], index: 2, kind: input, shape index: {}]   ;;  %s1482_s3 = inlined_call_operand.vmem [shape: f32[32,64], index: 3, kind: input, shape index: {}]   ;;  %s1483_s4 = inlined_call_operand.vmem [shape: f32[64,32], index: 4, kind: input, shape index: {}]   ;;  %s1484_s5 = inlined_call_operand.hbm [shape: f32[8,96], index: 5, kind: input, shape index: {}]   ;;  %s1485_s6 = inlined_call_operand.vmem [shape: f32[16,32], index: 6, kind: output, shape index: {0}]   ;;  %s1486_s7 = inlined_call_operand.hbm [shape: f32[16,8], index: 7, kind: output, shape index: {1}]  }
   0x1   :  { %14 = vsyncpa [#allocation4], 0  ;;  %s30_s26 = sshll.u32 %s1484_s5, 4  ;;  %s1167_s27 = smov [#allocation2]   ;;  %s31_s26 = int_to_ptr.hbm [resolvable:$true] %s30_s26 }
   0x2   :  { %s32_s28 = sshll.u32 %s1167_s27, 4  ;;  %s33_s28 = int_to_ptr.vmem [resolvable:$true] %s32_s28 }
   0x3   :  { %35 = dma.hbm_to_vmem [thread:$0]  %s31_s26, 128, %s33_s28, [#allocation3]  }
   0x4   :  { %1163 = dma.done.wait [#allocation3], 128  }
   0x5   :  { %1164 = vsyncadd [#allocation3], 4294967168  ;;  %v46_v0 = vld [vmem:[%s1480_s1 + $0x18] sm:$0xff]  ;;  %v45_v1 = vld [vmem:[%s1480_s1 + $0x10] sm:$0xff]  ;;  %vm48_vm0 = vcmask 261120   ;;  %s1169_s15 = smov 96  }
   0x6   :  { %67 = vmatpush.msra.mxu0 %v46_v0  ;;  %1053 = vmatpush.msra.mxu2 %v46_v0  ;;  %v44_v2 = vld [vmem:[%s1480_s1 + $0x8] sm:$0xff]  ;;  %v43_v3 = vld [vmem:[%s1480_s1] sm:$0xff]  ;;  %s1168_s1 = smov 120   ;;  %s1170_s16 = smov 88   ;;  %vm85_vm1 = vcmask 64512   ;;  %v80_v44 = vld [vmem:[%s1481_s2 + $0x10] sm:$0xff] }
   0x7   :  { %v1241_v4 = vld [vmem:[%s1479_s0] sm:$0xff]  ;;  %v1258_v9 = vld [vmem:[%s1479_s0 + $0x8] sm:$0xff]  ;;  %s1171_s0 = smov 112   ;;  %s1172_s19 = smov 72   ;;  %vm906_vm6 = vcmask 523264  }
   0x8   :  { %68 = vmatpush.msra.mxu0 %v45_v1  ;;  %1054 = vmatpush.msra.mxu2 %v45_v1  ;;  %v1245_v5 = vld [vmem:[#allocation2] sm:$0xff]  ;;  %s1173_s20 = smov 64   ;;  %s1174_s21 = smov 56   ;;  %v79_v41 = vld [vmem:[%s1481_s2 + $0x8] sm:$0xff] }
   0x9   :  { %v47_v6 = vperm.slane %v1245_v5, 0  ;;  %s1175_s22 = smov 80   ;;  %v78_v40 = vld [vmem:[%s1481_s2] sm:$0xff]  ;;  %s1176_s29 = smov 48  }
   0xa   :  { %69 = vmatpush.msra.mxu0 %v44_v2  ;;  %1055 = vmatpush.msra.mxu2 %v44_v2  ;;  %s1177_s30 = smov 104   ;;  %s1178_s8 = smov 40  }
   0xb   :  { %s1000_s11 = sshll.u32 %s1486_s7, 4  ;;  %s1181_s5 = smov 128   ;;  %s1001_s11 = int_to_ptr.hbm [resolvable:$true] %s1000_s11 }
   0xc   :  { %70 = vmatpush.msra.mxu0 %v43_v3  ;;  %1056 = vmatpush.msra.mxu2 %v43_v3  ;;  %s1182_s12 = smov 8  }
   0xd   :  { %1015 = vmatmul.msk.f32.vlgmr.msra.gmra.mxu0 %vm48_vm0, %v1241_v4  ;;  %1016 = vmatmul.msk.f32.vlgmr.msra.gmra.mxu2 %vm48_vm0, %v1258_v9 }
  0x8a   :  { %v72_v7 = vpop.f32.mrf.mxu0 }
  0x8b   :  { %v1248_v8 = vadd.f32 %v72_v7, %v47_v6 }
  0x8d   :  { %148 = vrot.lane.b32.xlu1 %v1248_v8, %s1168_s1  ;;  %83 = vrot.lane.b32.xlu0 %v1248_v8, %s1169_s15 }
  0x90   :  { %v75_v17 = vpop.f32.mrf.mxu2 }
  0x91   :  { %v1271_v18 = vadd.f32 %v75_v17, %v47_v6 }
  0x95   :  { %150 = vrot.lane.b32.xlu0 %v1248_v8, %s1170_s16 }
  0xff   :  { %v84_v10 = vpop.permute.xlu0 %83  ;;  %v149_v12 = vpop.permute.xlu1 %148 }
 0x100   :  { %1017 = vmatpush.xpose.msk.msra.mxu1 %vm85_vm1, %v84_v10 }
 0x103   :  { %1018 = vmatmul.msk.f32.vlgmr.msra.gmra.mxu1 %vm85_vm1, %v1248_v8 }
 0x104   :  { %231 = vmatpush.msrb.mxu1 %v79_v41 }
 0x107   :  { %v151_v11 = vpop.permute.xlu0 %150 }
 0x108   :  { %1020 = vmatpush.xpose.msk.msra.mxu3 %vm85_vm1, %v151_v11 }
 0x10b   :  { %1021 = vmatmul.msk.f32.vlgmr.msra.gmra.mxu3 %vm85_vm1, %v149_v12 }
 0x10c   :  { %254 = vmatpush.msrb.mxu3 %v78_v40 }
 0x10e   :  { %343 = vmatpush.msra.mxu3 %v80_v44 }
 0x180   :  { %v107_v13 = vpop.f32.mrf.mxu1 }
 0x181   :  { %v110_v14 = vsel %vm85_vm1, %v107_v13, -inf }
 0x182   :  { %111 = vmax.xlane.f32.xlu1 %v110_v14 }
 0x18e   :  { %v173_v15 = vpop.f32.mrf.mxu3 }
 0x18f   :  { %v176_v16 = vsel %vm85_vm1, %v173_v15, -inf }
 0x190   :  { %177 = vmax.xlane.f32.xlu2 %v176_v16 }
 0x19b   :  { %260 = vrot.lane.b32.xlu1 %v1248_v8, %s1171_s0 }
 0x1a3   :  { %442 = vrot.lane.b32.xlu1 %v1271_v18, %s1169_s15 }
 0x1ab   :  { %352 = vrot.lane.b32.xlu1 %v1248_v8, %s1172_s19 }
 0x1f5   :  { %v112_v19 = vpop.xlane.xlu1 %111 }
 0x1f6   :  { %v113_v20 = vsub.f32 %v107_v13, %v112_v19 }
 0x1f8   :  { %v114_v21 = vmul.f32 1.442695, %v113_v20 }
 0x1fa   :  { %1073 = vpow2.f32 %v114_v21 }
 0x200   :  { %v1074_v22 = vpop.eup %1073 }
 0x201   :  { %v116_v23 = vsel %vm85_vm1, %v1074_v22, 0.0 }
 0x202   :  { %117 = vadd.xlane.f32.xlu2 %v116_v23 }
 0x203   :  { %v178_v24 = vpop.xlane.xlu2 %177 }
 0x204   :  { %v179_v25 = vsub.f32 %v173_v15, %v178_v24 }
 0x206   :  { %v180_v26 = vmul.f32 1.442695, %v179_v25 }
 0x208   :  { %1075 = vpow2.f32 %v180_v26 }
 0x20d   :  { %v261_v39 = vpop.permute.xlu1 %260 }
 0x20e   :  { %v1076_v27 = vpop.eup %1075 }
 0x20f   :  { %v182_v28 = vsel %vm85_vm1, %v1076_v27, 0.0 }
 0x210   :  { %183 = vadd.xlane.f32.xlu0 %v182_v28 }
 0x215   :  { %v443_v45 = vpop.permute.xlu1 %442 }
 0x21a   :  { %121 = vrot.lane.b32.xlu2 %v1248_v8, %s1173_s20 }
 0x21d   :  { %v353_v59 = vpop.permute.xlu1 %352 }
 0x222   :  { %187 = vrot.lane.b32.xlu2 %v1248_v8, %s1174_s21 }
 0x22a   :  { %262 = vrot.lane.b32.xlu2 %v1248_v8, %s1175_s22 }
 0x275   :  { %v118_v29 = vpop.xlane.xlu2 %117 }
 0x276   :  { %1077 = vrcp.f32 %v118_v29 }
 0x27c   :  { %v1078_v30 = vpop.eup %1077 }
 0x27d   :  { %v122_v31 = vpop.permute.xlu2 %121  ;;  %v120_v32 = vmul.f32 %v1078_v30, %v1074_v22 }
 0x27e   :  { %142 = vmatpush.msrb.mxu2 %v122_v31 }
 0x27f   :  { %1019 = vmatmul.msk.f32.vlgmr.msrb.gmra.mxu2 %vm85_vm1, %v120_v32 }
 0x283   :  { %v184_v33 = vpop.xlane.xlu0 %183 }
 0x284   :  { %1079 = vrcp.f32 %v184_v33  ;;  %v1352_v33 = vld [vmem:[%s1481_s2 + $0x18] sm:$0xff] }
 0x285   :  { %v188_v34 = vpop.permute.xlu2 %187 }
 0x286   :  { %208 = vmatpush.msra.mxu2 %v188_v34 }
 0x28a   :  { %v1080_v35 = vpop.eup %1079 }
 0x28b   :  { %v186_v36 = vmul.f32 %v1080_v35, %v1076_v27 }
 0x28d   :  { %v259_v37 = vadd.f32 %v186_v36, %v120_v32  ;;  %1022 = vmatmul.msk.f32.vlgmr.msra.gmra.mxu2 %vm85_vm1, %v186_v36  ;;  %v263_v38 = vpop.permute.xlu2 %262 }
 0x28e   :  { %1025 = vmatpush.xpose.msk.msrb.mxu2 %vm85_vm1, %v263_v38 }
 0x295   :  { %1026 = vmatmul.msk.f32.vlgmr.msrb.gmra.mxu2 %vm85_vm1, %v261_v39 }
 0x302   :  { %v144_v42 = vpop.f32.mrf.mxu2 }
 0x303   :  { %1024 = vmatmul.msk.f32.vlgmr.msrb.gmra.mxu3 %vm85_vm1, %v144_v42 }
 0x304   :  { %1033 = vmatpush.xpose.msk.msrb.mxu3 %vm85_vm1, %v443_v45 }
 0x310   :  { %v210_v43 = vpop.f32.mrf.mxu2 }
 0x311   :  { %1023 = vmatmul.msk.f32.vlgmr.msrb.gmra.mxu1 %vm85_vm1, %v210_v43 }
 0x318   :  { %v285_v46 = vpop.f32.mrf.mxu2 }
 0x319   :  { %v288_v47 = vsel %vm85_vm1, %v285_v46, -inf }
 0x31a   :  { %289 = vmax.xlane.f32.xlu2 %v288_v47 }
 0x332   :  { %479 = vrot.lane.b32.xlu2 %v1271_v18, %s1173_s20 }
 0x386   :  { %v1319_v1 = vpop.f32.mrf.mxu3 }
 0x38d   :  { %v290_v48 = vpop.xlane.xlu2 %289 }
 0x38e   :  { %v291_v49 = vsub.f32 %v285_v46, %v290_v48  ;;  %v1311_v61 = vpop.f32.mrf.mxu1 }
 0x390   :  { %v292_v50 = vmul.f32 1.442695, %v291_v49 }
 0x392   :  { %1081 = vpow2.f32 %v292_v50 }
 0x395   :  { %v480_v51 = vpop.permute.xlu2 %479 }
 0x396   :  { %500 = vmatpush.msrb.mxu0 %v480_v51 }
 0x398   :  { %612 = vmatpush.msra.mxu0 %v78_v40  ;;  %v1082_v52 = vpop.eup %1081 }
 0x399   :  { %v294_v53 = vsel %vm85_vm1, %v1082_v52, 0.0 }
 0x39a   :  { %295 = vadd.xlane.f32.xlu0 %v294_v53 }
 0x3ae   :  { %299 = vrot.lane.b32.xlu0 %v1248_v8, %s1176_s29 }
 0x3b6   :  { %350 = vrot.lane.b32.xlu0 %v1248_v8, %s1177_s30 }
 0x40d   :  { %v296_v54 = vpop.xlane.xlu0 %295 }
 0x40e   :  { %1083 = vrcp.f32 %v296_v54  ;;  %v257_v54 = vadd.f32 %v1319_v1, %v1311_v61 }
 0x414   :  { %v1084_v55 = vpop.eup %1083 }
 0x415   :  { %v298_v56 = vmul.f32 %v1084_v55, %v1082_v52 }
 0x417   :  { %v349_v57 = vadd.f32 %v298_v56, %v259_v37 }
 0x420   :  { %v300_v58 = vpop.permute.xlu0 %299 }
 0x421   :  { %320 = vmatpush.msra.mxu1 %v300_v58  ;;  %v799_v58 = vperm.slane %v1245_v5, 1 }
 0x422   :  { %1027 = vmatmul.msk.f32.vlgmr.msra.gmra.mxu1 %vm85_vm1, %v298_v56 }
 0x423   :  { %1029 = vmatpush.xpose.msk.msrb.mxu1 %vm85_vm1, %v353_v59 }
 0x427   :  { %433 = vmatpush.msra.mxu1 %v1352_v33 }
 0x428   :  { %v351_v60 = vpop.permute.xlu0 %350 }
 0x42a   :  { %1030 = vmatmul.msk.f32.vlgmr.msrb.gmra.mxu1 %vm85_vm1, %v351_v60 }
 0x49f   :  { %v322_v62 = vpop.f32.mrf.mxu1 }
 0x4a0   :  { %1028 = vmatmul.msk.f32.vlgmr.msra.gmra.mxu3 %vm85_vm1, %v322_v62 }
 0x4a1   :  { %589 = vmatpush.msra.mxu3 %v79_v41 }
 0x4a7   :  { %v375_v63 = vpop.f32.mrf.mxu1 }
 0x4a8   :  { %1034 = vmatmul.msk.f32.vlgmr.msrb.gmra.mxu3 %vm85_vm1, %v1271_v18  ;;  %v378_v0 = vsel %vm85_vm1, %v375_v63, -inf }
 0x4a9   :  { %379 = vmax.xlane.f32.xlu2 %v378_v0  ;;  %701 = vmatpush.msrb.mxu3 %v80_v44 }
 0x4c1   :  { %620 = vrot.lane.b32.xlu2 %v1271_v18, %s1175_s22 }
 0x51c   :  { %v380_v2 = vpop.xlane.xlu2 %379 }
 0x51d   :  { %v381_v3 = vsub.f32 %v375_v63, %v380_v2 }
 0x51f   :  { %v382_v7 = vmul.f32 1.442695, %v381_v3 }
 0x521   :  { %1085 = vpow2.f32 %v382_v7 }
 0x523   :  { %v1321_v6 = vpop.f32.mrf.mxu3 }
 0x524   :  { %v621_v30 = vpop.permute.xlu2 %620  ;;  %v348_v56 = vadd.f32 %v1321_v6, %v257_v54 }
 0x527   :  { %v1086_v12 = vpop.eup %1085 }
 0x528   :  { %v384_v13 = vsel %vm85_vm1, %v1086_v12, 0.0 }
 0x52b   :  { %v465_v10 = vpop.f32.mrf.mxu3 }
 0x52c   :  { %v468_v11 = vsel %vm85_vm1, %v465_v10, -inf }
 0x52d   :  { %469 = vmax.xlane.f32.xlu1 %v468_v11 }
 0x535   :  { %385 = vadd.xlane.f32.xlu1 %v384_v13 }
 0x54e   :  { %508 = vrot.lane.b32.xlu1 %v1271_v18, %s1170_s16 }
 0x556   :  { %710 = vrot.lane.b32.xlu1 %v1271_v18, %s1172_s19 }
 0x5a0   :  { %v470_v14 = vpop.xlane.xlu1 %469 }
 0x5a1   :  { %v471_v15 = vsub.f32 %v465_v10, %v470_v14 }
 0x5a3   :  { %v472_v16 = vmul.f32 1.442695, %v471_v15 }
 0x5a5   :  { %1087 = vpow2.f32 %v472_v16  ;;  %v1179_v16 = vmov 32.0  }
 0x5a8   :  { %v386_v17 = vpop.xlane.xlu1 %385 }
 0x5a9   :  { %1089 = vrcp.f32 %v386_v17 }
 0x5ab   :  { %v1088_v19 = vpop.eup %1087 }
 0x5ac   :  { %v474_v20 = vsel %vm85_vm1, %v1088_v19, 0.0 }
 0x5ad   :  { %475 = vadd.xlane.f32.xlu0 %v474_v20 }
 0x5af   :  { %v1090_v21 = vpop.eup %1089 }
 0x5b0   :  { %v388_v22 = vmul.f32 %v1090_v21, %v1086_v12 }
 0x5b2   :  { %v439_v23 = vadd.f32 %v388_v22, %v349_v57 }
 0x5b4   :  { %v440_v24 = vmul.f32 0.25, %v439_v23 }
 0x5b6   :  { %990 = vst.msk [vmem:[#allocation5] sm:$0xff] %vm85_vm1, %v440_v24 }
 0x5c0   :  { %v509_v25 = vpop.permute.xlu1 %508 }
 0x5c1   :  { %389 = vrot.lane.b32.xlu0 %v1248_v8, %s1178_s8 }
 0x5c8   :  { %v711_v29 = vpop.permute.xlu1 %710 }
 0x5c9   :  { %506 = vrot.lane.b32.xlu0 %v1271_v18, %s1168_s1 }
 0x5d1   :  { %618 = vrot.lane.b32.xlu0 %v1271_v18, %s1171_s0 }
 0x5d9   :  { %708 = vrot.lane.b32.xlu0 %v1271_v18, %s1177_s30 }
 0x620   :  { %v476_v26 = vpop.xlane.xlu0 %475 }
 0x621   :  { %1091 = vrcp.f32 %v476_v26 }
 0x627   :  { %v1092_v27 = vpop.eup %1091 }
 0x628   :  { %v1339_v28 = vmul.f32 %v1092_v27, %v1088_v19 }
 0x62a   :  { %1035 = vmatmul.msk.f32.vlgmr.msrb.gmra.mxu0 %vm85_vm1, %v1339_v28 }
 0x62b   :  { %1045 = vmatpush.xpose.msk.msrb.mxu0 %vm85_vm1, %v711_v29 }
 0x633   :  { %v390_v8 = vpop.permute.xlu0 %389 }
 0x634   :  { %410 = vmatpush.msra.mxu2 %v390_v8 }
 0x635   :  { %1031 = vmatmul.msk.f32.vlgmr.msra.gmra.mxu2 %vm85_vm1, %v388_v22 }
 0x636   :  { %1036 = vmatpush.xpose.msk.msrb.mxu2 %vm85_vm1, %v509_v25 }
 0x63a   :  { %1041 = vmatpush.xpose.msk.msra.mxu2 %vm85_vm1, %v621_v30 }
 0x63b   :  { %v507_v31 = vpop.permute.xlu0 %506 }
 0x63d   :  { %1037 = vmatmul.msk.f32.vlgmr.msrb.gmra.mxu2 %vm85_vm1, %v507_v31 }
 0x643   :  { %v619_v32 = vpop.permute.xlu0 %618 }
 0x645   :  { %1042 = vmatmul.msk.f32.vlgmr.msra.gmra.mxu2 %vm85_vm1, %v619_v32 }
 0x64b   :  { %v709_v35 = vpop.permute.xlu0 %708 }
 0x6a7   :  { %v502_v34 = vpop.f32.mrf.mxu0 }
 0x6a8   :  { %1040 = vmatmul.msk.f32.vlgmr.msra.gmra.mxu0 %vm85_vm1, %v502_v34 }
 0x6b0   :  { %1046 = vmatmul.msk.f32.vlgmr.msrb.gmra.mxu0 %vm85_vm1, %v709_v35  ;;  %v864_v35 = vld [vmem:[%s1482_s3 + $0x18] sm:$0xff] }
 0x6b8   :  { %v412_v36 = vpop.f32.mrf.mxu2 }
 0x6b9   :  { %1032 = vmatmul.msk.f32.vlgmr.msra.gmra.mxu1 %vm85_vm1, %v412_v36  ;;  %v863_v36 = vld [vmem:[%s1482_s3 + $0x10] sm:$0xff] }
 0x6c0   :  { %v531_v37 = vpop.f32.mrf.mxu2 }
 0x6c1   :  { %v534_v38 = vsel %vm85_vm1, %v531_v37, -inf }
 0x6c2   :  { %535 = vmax.xlane.f32.xlu1 %v534_v38  ;;  %v861_v38 = vld [vmem:[%s1482_s3] sm:$0xff] }
 0x6c8   :  { %v643_v39 = vpop.f32.mrf.mxu2 }
 0x6c9   :  { %v646_v40 = vsel %vm85_vm1, %v643_v39, -inf }
 0x6ca   :  { %647 = vmax.xlane.f32.xlu0 %v646_v40 }
 0x725   :  { %v1360_v41 = vpop.f32.mrf.mxu0 }
 0x72d   :  { %v733_v42 = vpop.f32.mrf.mxu0 }
 0x72e   :  { %v736_v43 = vsel %vm85_vm1, %v733_v42, -inf }
 0x72f   :  { %737 = vmax.xlane.f32.xlu2 %v736_v43 }
 0x735   :  { %v536_v44 = vpop.xlane.xlu1 %535 }
 0x736   :  { %v537_v45 = vsub.f32 %v531_v37, %v536_v44  ;;  %v435_v55 = vpop.f32.mrf.mxu1  ;;  %v862_v37 = vld [vmem:[%s1482_s3 + $0x8] sm:$0xff] }
 0x737   :  { %v438_v57 = vadd.f32 %v435_v55, %v348_v56  ;;  %v904_v56 = vld [vmem:[%s1483_s4 + $0x38] sm:$0xff] }
 0x738   :  { %v538_v46 = vmul.f32 1.442695, %v537_v45  ;;  %921 = vmatpush.msra.mxu0 %v904_v56 }
 0x739   :  { %v800_v59 = vadd.f32 %v799_v58, %v438_v57  ;;  %v903_v57 = vld [vmem:[%s1483_s4 + $0x30] sm:$0xff] }
 0x73a   :  { %1093 = vpow2.f32 %v538_v46  ;;  %922 = vmatpush.msra.mxu0 %v903_v57 }
 0x73b   :  { %v802_v60 = vadd.f32 %v800_v59, %v1241_v4  ;;  %v902_v59 = vld [vmem:[%s1483_s4 + $0x28] sm:$0xff] }
 0x73c   :  { %923 = vmatpush.msra.mxu0 %v902_v59 }
 0x73d   :  { %v648_v47 = vpop.xlane.xlu0 %647  ;;  %v804_v62 = vsel %vm48_vm0, %v802_v60, 0.0 }
 0x73e   :  { %v649_v48 = vsub.f32 %v643_v39, %v648_v47 }
 0x740   :  { %v1094_v49 = vpop.eup %1093  ;;  %v650_v50 = vmul.f32 1.442695, %v649_v48 }
 0x741   :  { %v540_v51 = vsel %vm85_vm1, %v1094_v49, 0.0 }
 0x742   :  { %1095 = vpow2.f32 %v650_v50  ;;  %541 = vadd.xlane.f32.xlu1 %v540_v51 }
 0x748   :  { %v1096_v52 = vpop.eup %1095 }
 0x749   :  { %v652_v53 = vsel %vm85_vm1, %v1096_v52, 0.0 }
 0x74a   :  { %653 = vadd.xlane.f32.xlu0 %v652_v53 }
 0x75b   :  { %545 = vrot.lane.b32.xlu1 %v1271_v18, %s1174_s21 }
 0x75e   :  { %657 = vrot.lane.b32.xlu0 %v1271_v18, %s1176_s29 }
 0x785   :  { %805 = vadd.xlane.f32.xlu1 %v804_v62  ;;  %v900_v62 = vld [vmem:[%s1483_s4 + $0x18] sm:$0xff] }
 0x7a2   :  { %v738_v63 = vpop.xlane.xlu2 %737 }
 0x7a3   :  { %v739_v0 = vsub.f32 %v733_v42, %v738_v63  ;;  %v899_v63 = vld [vmem:[%s1483_s4 + $0x10] sm:$0xff] }
 0x7a5   :  { %v740_v2 = vmul.f32 1.442695, %v739_v0  ;;  %v898_v0 = vld [vmem:[%s1483_s4 + $0x8] sm:$0xff] }
 0x7a7   :  { %1097 = vpow2.f32 %v740_v2  ;;  %v897_v2 = vld [vmem:[%s1483_s4] sm:$0xff] }
 0x7ad   :  { %v1098_v3 = vpop.eup %1097 }
 0x7ae   :  { %v742_v61 = vsel %vm85_vm1, %v1098_v3, 0.0 }
 0x7af   :  { %743 = vadd.xlane.f32.xlu2 %v742_v61 }
 0x7b5   :  { %v542_v1 = vpop.xlane.xlu1 %541 }
 0x7b6   :  { %1099 = vrcp.f32 %v542_v1  ;;  %v865_v1 = vperm.slane %v1245_v5, 2 }
 0x7bc   :  { %v1100_v7 = vpop.eup %1099 }
 0x7bd   :  { %v654_v6 = vpop.xlane.xlu0 %653  ;;  %v544_v10 = vmul.f32 %v1100_v7, %v1094_v49  ;;  %v855_v49 = vperm.slane %v1245_v5, 4 }
 0x7be   :  { %1101 = vrcp.f32 %v654_v6 }
 0x7bf   :  { %v617_v4 = vadd.f32 %v544_v10, %v1339_v28  ;;  %1103 = vrcp.f32 %v1179_v16 }
 0x7c4   :  { %v1102_v11 = vpop.eup %1101 }
 0x7c5   :  { %v656_v12 = vmul.f32 %v1102_v11, %v1096_v52  ;;  %v1104_v17 = vpop.eup %1103  ;;  %v858_v52 = vperm.slane %v1245_v5, 5 }
 0x7c6   :  { %v811_v19 = vmul.f32 32.0, %v1104_v17  ;;  %vm815_vm2 = vweird.f32 %v1104_v17 }
 0x7c7   :  { %v707_v13 = vadd.f32 %v656_v12, %v617_v4  ;;  %747 = vrot.lane.b32.xlu2 %v1271_v18, %s1178_s8  ;;  %s1180_s8 = smov [#allocation5]  }
 0x7c8   :  { %v812_v20 = vsub.f32 1.0, %v811_v19  ;;  %s998_s9 = sshll.u32 %s1180_s8, 4  ;;  %s999_s9 = int_to_ptr.vmem [resolvable:$true] %s998_s9 }
 0x7ca   :  { %v813_v21 = vmul.f32 %v1104_v17, %v812_v20 }
 0x7cc   :  { %v814_v22 = vadd.f32 %v1104_v17, %v813_v21 }
 0x7cd   :  { %v546_v14 = vpop.permute.xlu1 %545 }
 0x7ce   :  { %566 = vmatpush.msrb.mxu1 %v546_v14  ;;  %v1384_v23 = vsel %vm815_vm2, %v1104_v17, %v814_v22  ;;  %v905_v17 = vperm.slane %v1245_v5, 3 }
 0x7cf   :  { %1038 = vmatmul.msk.f32.vlgmr.msrb.gmra.mxu1 %vm85_vm1, %v544_v10 }
 0x7d0   :  { %v658_v15 = vpop.permute.xlu0 %657 }
 0x7d1   :  { %678 = vmatpush.msra.mxu1 %v658_v15 }
 0x7d3   :  { %791 = vmatpush.msrb.mxu1 %v1352_v33 }
 0x7d7   :  { %1043 = vmatmul.msk.f32.vlgmr.msra.gmra.mxu1 %vm85_vm1, %v656_v12 }
 0x7f8   :  { %v806_v18 = vpop.xlane.xlu1 %805 }
 0x7f9   :  { %v817_v24 = vmul.f32 %v1384_v23, %v806_v18 }
 0x7fb   :  { %v819_v25 = vsub.f32 %v802_v60, %v817_v24  ;;  %v901_v60 = vld [vmem:[%s1483_s4 + $0x20] sm:$0xff] }
 0x7fc   :  { %924 = vmatpush.msra.mxu0 %v901_v60 }
 0x7fd   :  { %v821_v26 = vmul.f32 %v819_v25, %v819_v25 }
 0x7fe   :  { %925 = vmatpush.msra.mxu0 %v900_v62 }
 0x7ff   :  { %v823_v27 = vsel %vm48_vm0, %v821_v26, 0.0 }
 0x800   :  { %824 = vadd.xlane.f32.xlu2 %v823_v27  ;;  %926 = vmatpush.msra.mxu0 %v899_v63 }
 0x802   :  { %927 = vmatpush.msra.mxu0 %v898_v0 }
 0x804   :  { %928 = vmatpush.msra.mxu0 %v897_v2 }
 0x822   :  { %v744_v28 = vpop.xlane.xlu2 %743 }
 0x823   :  { %1105 = vrcp.f32 %v744_v28 }
 0x829   :  { %v1106_v29 = vpop.eup %1105 }
 0x82a   :  { %v746_v8 = vmul.f32 %v1106_v29, %v1098_v3  ;;  %v748_v30 = vpop.permute.xlu2 %747 }
 0x82b   :  { %768 = vmatpush.msrb.mxu2 %v748_v30 }
 0x82c   :  { %v797_v31 = vadd.f32 %v746_v8, %v707_v13  ;;  %1047 = vmatmul.msk.f32.vlgmr.msrb.gmra.mxu2 %vm85_vm1, %v746_v8 }
 0x82e   :  { %v798_v32 = vmul.f32 0.25, %v797_v31 }
 0x830   :  { %991 = vst.msk [vmem:[#allocation5 + $0x8] sm:$0xff] %vm85_vm1, %v798_v32 }
 0x831   :  { %1006 = dma.vmem_to_hbm [thread:$0]  %s999_s9, 256, %s1001_s11, [#allocation4], %s1181_s5, %s1181_s5, %s1182_s12  }
 0x84c   :  { %v568_v33 = vpop.f32.mrf.mxu1 }
 0x84d   :  { %1039 = vmatmul.msk.f32.vlgmr.msra.gmra.mxu3 %vm85_vm1, %v568_v33 }
 0x84e   :  { %884 = vmatpush.msra.mxu3 %v864_v35 }
 0x850   :  { %885 = vmatpush.msra.mxu3 %v863_v36 }
 0x852   :  { %886 = vmatpush.msra.mxu3 %v862_v37 }
 0x854   :  { %v680_v34 = vpop.f32.mrf.mxu1  ;;  %887 = vmatpush.msra.mxu3 %v861_v38 }
 0x855   :  { %1044 = vmatmul.msk.f32.vlgmr.msrb.gmra.mxu3 %vm85_vm1, %v680_v34 }
 0x873   :  { %v825_v39 = vpop.xlane.xlu2 %824 }
 0x874   :  { %v829_v40 = vmul.f32 %v825_v39, %v1384_v23 }
 0x876   :  { %v831_v42 = vadd.f32 1e-05, %v829_v40 }
 0x878   :  { %1107 = vrsqrt.f32 %v831_v42  ;;  %vm839_vm4 = vweird.f32 %v831_v42 }
 0x87e   :  { %v1108_v43 = vpop.eup %1107 }
 0x87f   :  { %v834_v44 = vmul.f32 %v1108_v43, %v831_v42  ;;  %vm840_vm3 = vweird.f32 %v1108_v43 }
 0x880   :  { %vm841_vm5 = vmor %vm839_vm4, %vm840_vm3 }
 0x881   :  { %v835_v45 = vmul.f32 %v1108_v43, %v834_v44 }
 0x883   :  { %v836_v46 = vmul.f32 0.5, %v835_v45 }
 0x885   :  { %v837_v47 = vsub.f32 1.5, %v836_v46 }
 0x887   :  { %v838_v48 = vmul.f32 %v1108_v43, %v837_v47 }
 0x889   :  { %v842_v50 = vsel %vm841_vm5, %v1108_v43, %v838_v48 }
 0x88a   :  { %v853_v51 = vmul.f32 %v842_v50, %v819_v25 }
 0x88c   :  { %v856_v53 = vmul.f32 %v855_v49, %v853_v51 }
 0x88e   :  { %v859_v54 = vadd.f32 %v858_v52, %v856_v53 }
 0x890   :  { %1049 = vmatmul.msk.f32.vlgmr.msra.gmra.mxu3 %vm48_vm0, %v859_v54 }
 0x8af   :  { %v770_v55 = vpop.f32.mrf.mxu2 }
 0x8b0   :  { %1048 = vmatmul.msk.f32.vlgmr.msrb.gmra.mxu1 %vm85_vm1, %v770_v55 }
 0x8d0   :  { %v591_v3 = vpop.f32.mrf.mxu3 }
 0x8d1   :  { %v615_v11 = vadd.f32 %v1360_v41, %v591_v3 }
 0x8d8   :  { %v703_v61 = vpop.f32.mrf.mxu3 }
 0x8d9   :  { %v706_v4 = vadd.f32 %v703_v61, %v615_v11 }
 0x913   :  { %v889_v6 = vpop.f32.mrf.mxu3 }
 0x914   :  { %v890_v7 = vadd.f32 %v889_v6, %v865_v1 }
 0x916   :  { %v895_v10 = vmax.f32 %v890_v7, 0.0 }
 0x918   :  { %1051 = vmatmul.msk.f32.vlgmr.msra.gmra.mxu0 %vm906_vm6, %v895_v10 }
 0x92d   :  { %v793_v12 = vpop.f32.mrf.mxu1 }
 0x92e   :  { %v796_v13 = vadd.f32 %v793_v12, %v706_v4 }
 0x930   :  { %v801_v14 = vadd.f32 %v799_v58, %v796_v13 }
 0x932   :  { %v803_v15 = vadd.f32 %v801_v14, %v1258_v9 }
 0x934   :  { %v807_v16 = vsel %vm48_vm0, %v803_v15, 0.0 }
 0x935   :  { %808 = vadd.xlane.f32.xlu0 %v807_v16 }
 0x995   :  { %v930_v19 = vpop.f32.mrf.mxu0 }
 0x996   :  { %v931_v20 = vadd.f32 %v930_v19, %v905_v17 }
 0x998   :  { %v936_v21 = vadd.f32 %v931_v20, %v859_v54 }
 0x99a   :  { %v938_v22 = vsel %vm48_vm0, %v936_v21, 0.0 }
 0x99b   :  { %939 = vadd.xlane.f32.xlu0 %v938_v22 }
 0x9a8   :  { %v809_v41 = vpop.xlane.xlu0 %808 }
 0x9a9   :  { %v818_v18 = vmul.f32 %v1384_v23, %v809_v41 }
 0x9ab   :  { %v820_v24 = vsub.f32 %v803_v15, %v818_v18 }
 0x9ad   :  { %v822_v25 = vmul.f32 %v820_v24, %v820_v24 }
 0x9af   :  { %v826_v58 = vsel %vm48_vm0, %v822_v25, 0.0 }
 0x9b0   :  { %827 = vadd.xlane.f32.xlu1 %v826_v58 }
 0xa0e   :  { %v940_v9 = vpop.xlane.xlu0 %939 }
 0xa0f   :  { %v944_v26 = vmul.f32 %v940_v9, %v1384_v23 }
 0xa11   :  { %v946_v27 = vsub.f32 %v936_v21, %v944_v26 }
 0xa13   :  { %v948_v28 = vmul.f32 %v946_v27, %v946_v27 }
 0xa15   :  { %v950_v29 = vsel %vm48_vm0, %v948_v28, 0.0 }
 0xa16   :  { %951 = vadd.xlane.f32.xlu0 %v950_v29 }
 0xa23   :  { %v828_v8 = vpop.xlane.xlu1 %827 }
 0xa24   :  { %v830_v30 = vmul.f32 %v828_v8, %v1384_v23 }
 0xa26   :  { %v832_v31 = vadd.f32 1e-05, %v830_v30 }
 0xa28   :  { %1109 = vrsqrt.f32 %v832_v31  ;;  %vm849_vm8 = vweird.f32 %v832_v31 }
 0xa2e   :  { %v1110_v32 = vpop.eup %1109 }
 0xa2f   :  { %v844_v33 = vmul.f32 %v1110_v32, %v832_v31  ;;  %vm850_vm7 = vweird.f32 %v1110_v32 }
 0xa30   :  { %vm851_vm9 = vmor %vm849_vm8, %vm850_vm7 }
 0xa31   :  { %v845_v34 = vmul.f32 %v1110_v32, %v844_v33 }
 0xa33   :  { %v846_v35 = vmul.f32 0.5, %v845_v34 }
 0xa35   :  { %v847_v36 = vsub.f32 1.5, %v846_v35 }
 0xa37   :  { %v848_v37 = vmul.f32 %v1110_v32, %v847_v36 }
 0xa39   :  { %v852_v38 = vsel %vm851_vm9, %v1110_v32, %v848_v37 }
 0xa3a   :  { %v854_v39 = vmul.f32 %v852_v38, %v820_v24 }
 0xa3c   :  { %v857_v40 = vmul.f32 %v855_v49, %v854_v39  ;;  %v982_v49 = vperm.slane %v1245_v5, 6 }
 0xa3e   :  { %v860_v42 = vadd.f32 %v858_v52, %v857_v40  ;;  %v985_v52 = vperm.slane %v1245_v5, 7 }
 0xa40   :  { %1050 = vmatmul.msk.f32.gmra.mxu3 %vm48_vm0, %v860_v42 }
 0xa89   :  { %v952_v43 = vpop.xlane.xlu0 %951 }
 0xa8a   :  { %v956_v44 = vmul.f32 %v952_v43, %v1384_v23 }
 0xa8c   :  { %v958_v45 = vadd.f32 1e-05, %v956_v44 }
 0xa8e   :  { %1111 = vrsqrt.f32 %v958_v45  ;;  %vm966_vm11 = vweird.f32 %v958_v45 }
 0xa94   :  { %v1112_v46 = vpop.eup %1111 }
 0xa95   :  { %v961_v47 = vmul.f32 %v1112_v46, %v958_v45  ;;  %vm967_vm10 = vweird.f32 %v1112_v46 }
 0xa96   :  { %vm968_vm12 = vmor %vm966_vm11, %vm967_vm10 }
 0xa97   :  { %v962_v48 = vmul.f32 %v1112_v46, %v961_v47 }
 0xa99   :  { %v963_v50 = vmul.f32 0.5, %v962_v48 }
 0xa9b   :  { %v964_v51 = vsub.f32 1.5, %v963_v50 }
 0xa9d   :  { %v965_v53 = vmul.f32 %v1112_v46, %v964_v51 }
 0xa9f   :  { %v969_v54 = vsel %vm968_vm12, %v1112_v46, %v965_v53 }
 0xaa0   :  { %v980_v55 = vmul.f32 %v969_v54, %v946_v27 }
 0xaa2   :  { %v983_v56 = vmul.f32 %v982_v49, %v980_v55 }
 0xaa4   :  { %v986_v57 = vadd.f32 %v985_v52, %v983_v56 }
 0xaa6   :  { %988 = vst.msk [vmem:[%s1485_s6] sm:$0xff] %vm48_vm0, %v986_v57 }
 0xac3   :  { %v892_v59 = vpop.f32.mrf.mxu3 }
 0xac4   :  { %v893_v60 = vadd.f32 %v892_v59, %v865_v1 }
 0xac6   :  { %v896_v62 = vmax.f32 %v893_v60, 0.0 }
 0xac8   :  { %1052 = vmatmul.msk.f32.gmra.mxu0 %vm906_vm6, %v896_v62 }
 0xb45   :  { %v933_v63 = vpop.f32.mrf.mxu0 }
 0xb46   :  { %v934_v0 = vadd.f32 %v933_v63, %v905_v17 }
 0xb48   :  { %v937_v2 = vadd.f32 %v934_v0, %v860_v42 }
 0xb4a   :  { %v941_v3 = vsel %vm48_vm0, %v937_v2, 0.0 }
 0xb4b   :  { %942 = vadd.xlane.f32.xlu1 %v941_v3 }
 0xbbe   :  { %v943_v61 = vpop.xlane.xlu1 %942 }
 0xbbf   :  { %v945_v6 = vmul.f32 %v943_v61, %v1384_v23 }
 0xbc1   :  { %v947_v7 = vsub.f32 %v937_v2, %v945_v6 }
 0xbc3   :  { %v949_v10 = vmul.f32 %v947_v7, %v947_v7 }
 0xbc5   :  { %v953_v11 = vsel %vm48_vm0, %v949_v10, 0.0 }
 0xbc6   :  { %954 = vadd.xlane.f32.xlu2 %v953_v11 }
 0xc39   :  { %v955_v5 = vpop.xlane.xlu2 %954 }
 0xc3a   :  { %v957_v1 = vmul.f32 %v955_v5, %v1384_v23 }
 0xc3c   :  { %v959_v4 = vadd.f32 1e-05, %v957_v1 }
 0xc3e   :  { %1113 = vrsqrt.f32 %v959_v4  ;;  %vm976_vm14 = vweird.f32 %v959_v4 }
 0xc44   :  { %v1114_v12 = vpop.eup %1113 }
 0xc45   :  { %v971_v13 = vmul.f32 %v1114_v12, %v959_v4  ;;  %vm977_vm13 = vweird.f32 %v1114_v12 }
 0xc46   :  { %vm978_vm15 = vmor %vm976_vm14, %vm977_vm13 }
 0xc47   :  { %v972_v14 = vmul.f32 %v1114_v12, %v971_v13 }
 0xc49   :  { %v973_v15 = vmul.f32 0.5, %v972_v14 }
 0xc4b   :  { %v974_v16 = vsub.f32 1.5, %v973_v15 }
 0xc4d   :  { %v975_v17 = vmul.f32 %v1114_v12, %v974_v16 }
 0xc4f   :  { %v979_v19 = vsel %vm978_vm15, %v1114_v12, %v975_v17 }
 0xc50   :  { %v981_v20 = vmul.f32 %v979_v19, %v947_v7 }
 0xc52   :  { %v984_v21 = vmul.f32 %v982_v49, %v981_v20 }
 0xc54   :  { %v987_v22 = vadd.f32 %v985_v52, %v984_v21 }
 0xc56   :  { %989 = vst.msk [vmem:[%s1485_s6 + $0x8] sm:$0xff] %vm48_vm0, %v987_v22 }
 0xc57   :  { %1165 = dma.done.wait [#allocation4], 256  }
 0xc58   :  { %1166 = vsyncadd [#allocation4], 4294967040 }
 0xc59   :  { %1013 = vsyncpa [#allocation3], 1 }
 0xc5a   :  { %1014 = vsyncpa [#allocation4], 1 }

</bundles_post_ra>
